<compile_context>
chip_gen: v6e
topology: v6e:2x2x1
jax: 0.10.0
libtpu: 0.0.40
codegen_flags: <defaults>
</compile_context>

<pallas_src>
import functools

import jax
import jax.numpy as jnp
from jax.experimental import pallas as pl
from jax.experimental.pallas import tpu as pltpu


def _flash_attn_kernel(q_ref, kt_ref, v_ref, out_ref, m_scr, l_scr, acc_scr,
                       *, hw, tkv, mask_kv):
    # q_ref:   (1, Kc, tq)  bf16  query tile, channels-first (resident across the kv axis)
    # kt_ref:  (1, tkv, Kc) bf16  key tile, spatial-first (canonical lhs for the energy matmul)
    # v_ref:   (1, C,  tkv) bf16  value tile, channels-first
    # out_ref: (1, C,  tq)  f32   attention output tile (lane-dense on tq)
    # m_scr:   (1, tq) f32  running max         l_scr: (1, tq) f32  running denominator
    # acc_scr: (C, tq) f32  unnormalized attention-output accumulator
    ki = pl.program_id(2)

    @pl.when(ki == 0)
    def _init():
        m_scr[...] = jnp.full_like(m_scr, -jnp.inf)
        l_scr[...] = jnp.zeros_like(l_scr)
        acc_scr[...] = jnp.zeros_like(acc_scr)

    q = q_ref[0]                                  # (Kc, tq)  bf16
    kt = kt_ref[0]                                # (tkv, Kc) bf16
    v = v_ref[0]                                  # (C, tkv)  bf16

    # energy[j, i] = <k_j, q_i>  (transposed vs. torch; the softmax axis is the sublane axis).
    # bf16 x bf16 with f32 accumulation -> single native MXU pass.
    energy = jnp.dot(kt, q, preferred_element_type=jnp.float32)          # (tkv, tq) f32

    if mask_kv:
        # Last kv tile is ragged (kv axis was zero-padded up to a multiple of tkv upstream).
        kv_idx = ki * tkv + jax.lax.broadcasted_iota(jnp.int32, energy.shape, 0)
        energy = jnp.where(kv_idx < hw, energy, -1e30)

    # Online (flash-style) softmax over the kv (sublane) axis; statistics stay f32 and are
    # lane-dense (1, tq) rows.
    m_prev = m_scr[...]
    m_new = jnp.maximum(m_prev, jnp.max(energy, axis=0, keepdims=True))  # (1, tq)
    alpha = jnp.exp(m_prev - m_new)                                      # (1, tq)
    p = jnp.exp(energy - m_new)                                          # (tkv, tq)
    l_scr[...] = alpha * l_scr[...] + jnp.sum(p, axis=0, keepdims=True)
    acc_scr[...] = alpha * acc_scr[...] + jnp.dot(
        v, p.astype(jnp.bfloat16), preferred_element_type=jnp.float32)   # (C, tq)
    m_scr[...] = m_new

    @pl.when(ki == pl.num_programs(2) - 1)
    def _finalize():
        inv_l = pl.reciprocal(l_scr[...], approx=True)    # EUP slot, effectively free
        # Channels-first accumulator -> direct lane-dense store, no transpose needed.
        out_ref[0] = (acc_scr[...] * inv_l).astype(out_ref.dtype)


def _round_up(x, m):
    return ((x + m - 1) // m) * m


def _choose_tile(hw, target):
    """Pick a spatial tile and the (possibly padded) extent it implies.

    Either a single full-extent block (no padding), or a multiple of 128 with the axis
    zero-padded up to a multiple of the tile so every block is in-bounds (no reliance on
    out-of-bounds block semantics; ragged HW like 50x50 stays VMEM-bounded).
    """
    if hw <= target:
        return hw, hw
    t = max(128, (target // 128) * 128)
    return t, _round_up(hw, t)


@functools.partial(jax.jit, static_argnames=("tq_target", "tkv_target"))
def self_attention_2d(x, params, *, tq_target=512, tkv_target=1024):
    """Forward pass of SelfAttention2D.  x: [B, C, H, W] (NCHW, like the PyTorch module)."""
    B, C, H, W = x.shape
    HW = H * W
    Kc = params["wq"].shape[0]

    xf = x.reshape(B, C, HW).astype(jnp.float32)

    # 1x1 conv == per-pixel linear projection.  Done once per image in f32 by XLA (tiny matmuls),
    # then cast to bf16 for the quadratic-cost attention kernel.
    def proj(w, b, out_layout):
        y = jnp.einsum("oc,bcn->bon", w.astype(jnp.float32), xf) + b.astype(jnp.float32)[None, :, None]
        if out_layout == "bno":                       # spatial-first (for K)
            y = jnp.transpose(y, (0, 2, 1))
        return y.astype(jnp.bfloat16)

    q = proj(params["wq"], params["bq"], "bon")       # (B, Kc, HW)
    kt = proj(params["wk"], params["bk"], "bno")      # (B, HW, Kc)
    v = proj(params["wv"], params["bv"], "bon")       # (B, C,  HW)

    tq, hw_q = _choose_tile(HW, tq_target)
    tkv, hw_kv = _choose_tile(HW, tkv_target)
    if hw_q > HW:
        q = jnp.pad(q, ((0, 0), (0, 0), (0, hw_q - HW)))
    if hw_kv > HW:
        kt = jnp.pad(kt, ((0, 0), (0, hw_kv - HW), (0, 0)))
        v = jnp.pad(v, ((0, 0), (0, 0), (0, hw_kv - HW)))

    grid = (B, hw_q // tq, hw_kv // tkv)

    kernel = functools.partial(_flash_attn_kernel, hw=HW, tkv=tkv, mask_kv=(hw_kv > HW))

    # VMEM sizing: dominated by the (tkv, tq) f32 energy/p intermediates, plus double-buffered
    # bf16 kv/q tiles, the f32 output block and scratch.  2x slack, floor at the 32 MiB default,
    # capped at 48 MiB so it stays comfortably inside v7x's 64 MiB/TensorCore.
    est = (4 * tq * tkv * 4                      # energy / p f32 intermediates (+slack)
           + 2 * (Kc + C) * tkv * 2              # double-buffered k/v bf16 tiles
           + 2 * Kc * tq * 2                     # q tile (resident)
           + 2 * C * tq * 4                      # double-buffered f32 output block
           + (C + 2) * tq * 4)                   # acc + m + l scratch
    vmem_limit = int(min(max(2 * est, 32 * 1024 * 1024), 48 * 1024 * 1024))

    attn = pl.pallas_call(
        kernel,
        out_shape=jax.ShapeDtypeStruct((B, C, hw_q), jnp.float32),
        grid_spec=pltpu.PrefetchScalarGridSpec(
            num_scalar_prefetch=0,
            grid=grid,
            in_specs=[
                pl.BlockSpec((1, Kc, tq), lambda b, qi, ki: (b, 0, qi)),    # q (kv-invariant)
                pl.BlockSpec((1, tkv, Kc), lambda b, qi, ki: (b, ki, 0)),   # k^T stream
                pl.BlockSpec((1, C, tkv), lambda b, qi, ki: (b, 0, ki)),    # v stream
            ],
            out_specs=pl.BlockSpec((1, C, tq), lambda b, qi, ki: (b, 0, qi)),
            scratch_shapes=[
                pltpu.VMEM((1, tq), jnp.float32),    # running max
                pltpu.VMEM((1, tq), jnp.float32),    # running denominator
                pltpu.VMEM((C, tq), jnp.float32),    # output accumulator
            ],
        ),
        compiler_params=pltpu.CompilerParams(
            dimension_semantics=("parallel", "parallel", "arbitrary"),
            vmem_limit_bytes=vmem_limit,
        ),
    )(q, kt, v)

    attn = attn[:, :, :HW].reshape(B, C, H, W)
    # gamma * attention + residual on the ORIGINAL f32 x (not a bf16 copy); XLA fuses this.
    gamma = params["gamma"].astype(jnp.float32)[0]
    out = gamma * attn + x.astype(jnp.float32)
    return out.astype(x.dtype)


def reference_forward(x, params):
    """Pure-JAX f32 reference mirroring the PyTorch forward (NCHW)."""
    B, C, H, W = x.shape
    HW = H * W
    xf = x.astype(jnp.float32)

    def conv1x1(t, w, b):
        return jnp.einsum("oc,bchw->bohw", w, t) + b[None, :, None, None]

    query = conv1x1(xf, params["wq"], params["bq"]).reshape(B, -1, HW).transpose(0, 2, 1)
    key = conv1x1(xf, params["wk"], params["bk"]).reshape(B, -1, HW)
    energy = jnp.einsum("bik,bkj->bij", query, key)
    attention = jax.nn.softmax(energy, axis=-1)
    value = conv1x1(xf, params["wv"], params["bv"]).reshape(B, -1, HW)
    out = jnp.einsum("bcj,bij->bci", value, attention).reshape(B, C, H, W)
    return params["gamma"][0] * out + xf


def _make_params(key, C):
    Kc = C // 8
    ks = jax.random.split(key, 7)
    return {
        "wq": 0.1 * jax.random.normal(ks[0], (Kc, C), jnp.float32),
        "bq": 0.1 * jax.random.normal(ks[1], (Kc,), jnp.float32),
        "wk": 0.1 * jax.random.normal(ks[2], (Kc, C), jnp.float32),
        "bk": 0.1 * jax.random.normal(ks[3], (Kc,), jnp.float32),
        "wv": 0.1 * jax.random.normal(ks[4], (C, C), jnp.float32),
        "bv": 0.1 * jax.random.normal(ks[5], (C,), jnp.float32),
        # PyTorch initializes gamma to 0 (output == input); use a nonzero value so the
        # attention path is actually exercised / validated.
        "gamma": jnp.array([0.5], jnp.float32),
    }


if __name__ == "__main__":
    key = jax.random.PRNGKey(0)
    kx1, kx2, kx3, kp1, kp2, kp3 = jax.random.split(key, 6)

    # 1) Small shapes consistent with the module (in_channels=32 -> key_channels=4).
    B, C, H, W = 2, 32, 8, 8
    x = jax.random.normal(kx1, (B, C, H, W), jnp.float32)
    params = _make_params(kp1, C)
    out = jax.block_until_ready(self_attention_2d(x, params))
    ref = reference_forward(x, params)
    assert out.shape == (B, C, H, W)
    assert out.dtype == x.dtype
    assert jnp.allclose(out, ref, atol=3e-2, rtol=3e-2), "mismatch vs JAX reference (small)"

    # 2) Multi-tile online-softmax path (HW=1024 -> tq=512, tkv=1024).
    x2 = jax.random.normal(kx2, (1, 32, 32, 32), jnp.float32)
    params2 = _make_params(kp2, 32)
    out2 = jax.block_until_ready(self_attention_2d(x2, params2))
    ref2 = reference_forward(x2, params2)
    assert jnp.allclose(out2, ref2, atol=3e-2, rtol=3e-2), "mismatch vs JAX reference (tiled)"

    # 3) Ragged spatial extent (HW=1296 has no 128-multiple divisor): zero-padded tiles + kv mask.
    x3 = jax.random.normal(kx3, (1, 32, 36, 36), jnp.float32)
    params3 = _make_params(kp3, 32)
    out3 = jax.block_until_ready(self_attention_2d(x3, params3))
    ref3 = reference_forward(x3, params3)
    assert jnp.allclose(out3, ref3, atol=3e-2, rtol=3e-2), "mismatch vs JAX reference (ragged)"

    print("KERNEL_OK")
</pallas_src>

<mosaic_0001>
module attributes {stable_mosaic.version = 11 : i64} {
  func.func @_flash_attn_kernel(%arg0: i32, %arg1: i32, %arg2: i32, %arg3: memref<1x4x64xbf16, #tpu.memory_space<vmem>>, %arg4: memref<1x64x4xbf16, #tpu.memory_space<vmem>>, %arg5: memref<1x32x64xbf16, #tpu.memory_space<vmem>>, %arg6: memref<1x32x64xf32, #tpu.memory_space<vmem>>, %arg7: memref<1x64xf32, #tpu.memory_space<vmem>>, %arg8: memref<1x64xf32, #tpu.memory_space<vmem>>, %arg9: memref<32x64xf32, #tpu.memory_space<vmem>>) attributes {dimension_semantics = [#tpu.dimension_semantics<parallel>, #tpu.dimension_semantics<parallel>, #tpu.dimension_semantics<arbitrary>], iteration_bounds = array<i64: 2, 1, 1>, scalar_prefetch = 0 : i64, scratch_operands = 3 : i64, tpu.core_type = #tpu.core_type<tc>, window_params = [{transform_indices = @transform_0, window_bounds = array<i64: 1, 4, 64>}, {transform_indices = @transform_1, window_bounds = array<i64: 1, 64, 4>}, {transform_indices = @transform_2, window_bounds = array<i64: 1, 32, 64>}, {transform_indices = @transform_3, window_bounds = array<i64: 1, 32, 64>}]} {
    %c0_i32 = arith.constant 0 : i32
    %0 = arith.cmpi eq, %arg2, %c0_i32 : i32
    %1 = arith.extui %0 : i1 to i32
    %c0_i32_0 = arith.constant 0 : i32
    %2 = arith.cmpi ne, %1, %c0_i32_0 : i32
    scf.if %2 {
      %cst_26 = arith.constant 0xFF800000 : f32
      %36 = vector.broadcast %cst_26 : f32 to vector<1x64xf32>
      %c0_27 = arith.constant 0 : index
      %c0_28 = arith.constant 0 : index
      %37 = vector.load %arg7[%c0_27, %c0_28] : memref<1x64xf32, #tpu.memory_space<vmem>>, vector<1x64xf32>
      tpu.vector_store %arg7[%c0_27, %c0_28], %36 {strides = array<i32>} : memref<1x64xf32, #tpu.memory_space<vmem>>, vector<1x64xf32>,
      %cst_29 = arith.constant 0.000000e+00 : f32
      %38 = vector.broadcast %cst_29 : f32 to vector<1x64xf32>
      %c0_30 = arith.constant 0 : index
      %c0_31 = arith.constant 0 : index
      %39 = vector.load %arg8[%c0_30, %c0_31] : memref<1x64xf32, #tpu.memory_space<vmem>>, vector<1x64xf32>
      tpu.vector_store %arg8[%c0_30, %c0_31], %38 {strides = array<i32>} : memref<1x64xf32, #tpu.memory_space<vmem>>, vector<1x64xf32>,
      %cst_32 = arith.constant 0.000000e+00 : f32
      %40 = vector.broadcast %cst_32 : f32 to vector<32x64xf32>
      %c0_33 = arith.constant 0 : index
      %c0_34 = arith.constant 0 : index
      %41 = vector.load %arg9[%c0_33, %c0_34] : memref<32x64xf32, #tpu.memory_space<vmem>>, vector<32x64xf32>
      tpu.vector_store %arg9[%c0_33, %c0_34], %40 {strides = array<i32>} : memref<32x64xf32, #tpu.memory_space<vmem>>, vector<32x64xf32>,
    } else {
    }
    %c0 = arith.constant 0 : index
    %c0_1 = arith.constant 0 : index
    %c0_2 = arith.constant 0 : index
    %3 = vector.load %arg3[%c0, %c0_1, %c0_2] : memref<1x4x64xbf16, #tpu.memory_space<vmem>>, vector<1x4x64xbf16>
    %4 = vector.shape_cast %3 : vector<1x4x64xbf16> to vector<4x64xbf16>
    %c0_3 = arith.constant 0 : index
    %c0_4 = arith.constant 0 : index
    %c0_5 = arith.constant 0 : index
    %5 = vector.load %arg4[%c0_3, %c0_4, %c0_5] : memref<1x64x4xbf16, #tpu.memory_space<vmem>>, vector<1x64x4xbf16>
    %6 = vector.shape_cast %5 : vector<1x64x4xbf16> to vector<64x4xbf16>
    %c0_6 = arith.constant 0 : index
    %c0_7 = arith.constant 0 : index
    %c0_8 = arith.constant 0 : index
    %7 = vector.load %arg5[%c0_6, %c0_7, %c0_8] : memref<1x32x64xbf16, #tpu.memory_space<vmem>>, vector<1x32x64xbf16>
    %8 = vector.shape_cast %7 : vector<1x32x64xbf16> to vector<32x64xbf16>
    %cst = arith.constant dense<0.000000e+00> : vector<64x64xf32>
    %9 = tpu.matmul %6, %4, %cst {dimension_numbers = #tpu.dot_dimension_numbers<[1], [0], [0], [1], [0, 0, 1, 1], [], []>} : vector<64x4xbf16>, vector<4x64xbf16>, vector<64x64xf32> -> vector<64x64xf32>
    %c0_9 = arith.constant 0 : index
    %c0_10 = arith.constant 0 : index
    %10 = vector.load %arg7[%c0_9, %c0_10] : memref<1x64xf32, #tpu.memory_space<vmem>>, vector<1x64xf32>
    %cst_11 = arith.constant dense<0xFF800000> : vector<64xf32>
    %11 = vector.multi_reduction <maximumf>, %9, %cst_11 [0] : vector<64x64xf32> to vector<64xf32>
    %12 = vector.shape_cast %11 : vector<64xf32> to vector<1x64xf32>
    %13 = arith.maximumf %10, %12 : vector<1x64xf32>
    %14 = arith.subf %10, %13 : vector<1x64xf32>
    %15 = math.exp %14 : vector<1x64xf32>
    %16 = vector.broadcast %13 : vector<1x64xf32> to vector<64x64xf32>
    %17 = arith.subf %9, %16 : vector<64x64xf32>
    %18 = math.exp %17 : vector<64x64xf32>
    %c0_12 = arith.constant 0 : index
    %c0_13 = arith.constant 0 : index
    %19 = vector.load %arg8[%c0_12, %c0_13] : memref<1x64xf32, #tpu.memory_space<vmem>>, vector<1x64xf32>
    %20 = arith.mulf %15, %19 : vector<1x64xf32>
    %cst_14 = arith.constant dense<0.000000e+00> : vector<64xf32>
    %21 = vector.multi_reduction <add>, %18, %cst_14 [0] : vector<64x64xf32> to vector<64xf32>
    %22 = vector.shape_cast %21 : vector<64xf32> to vector<1x64xf32>
    %23 = arith.addf %20, %22 : vector<1x64xf32>
    %c0_15 = arith.constant 0 : index
    %c0_16 = arith.constant 0 : index
    %24 = vector.load %arg8[%c0_15, %c0_16] : memref<1x64xf32, #tpu.memory_space<vmem>>, vector<1x64xf32>
    tpu.vector_store %arg8[%c0_15, %c0_16], %23 {strides = array<i32>} : memref<1x64xf32, #tpu.memory_space<vmem>>, vector<1x64xf32>,
    %c0_17 = arith.constant 0 : index
    %c0_18 = arith.constant 0 : index
    %25 = vector.load %arg9[%c0_17, %c0_18] : memref<32x64xf32, #tpu.memory_space<vmem>>, vector<32x64xf32>
    %26 = vector.broadcast %15 : vector<1x64xf32> to vector<32x64xf32>
    %27 = arith.mulf %26, %25 : vector<32x64xf32>
    %28 = arith.truncf %18 : vector<64x64xf32> to vector<64x64xbf16>
    %cst_19 = arith.constant dense<0.000000e+00> : vector<32x64xf32>
    %29 = tpu.matmul %8, %28, %cst_19 {dimension_numbers = #tpu.dot_dimension_numbers<[1], [0], [0], [1], [0, 0, 1, 1], [], []>} : vector<32x64xbf16>, vector<64x64xbf16>, vector<32x64xf32> -> vector<32x64xf32>
    %30 = arith.addf %27, %29 : vector<32x64xf32>
    %c0_20 = arith.constant 0 : index
    %c0_21 = arith.constant 0 : index
    %31 = vector.load %arg9[%c0_20, %c0_21] : memref<32x64xf32, #tpu.memory_space<vmem>>, vector<32x64xf32>
    tpu.vector_store %arg9[%c0_20, %c0_21], %30 {strides = array<i32>} : memref<32x64xf32, #tpu.memory_space<vmem>>, vector<32x64xf32>,
    %c0_22 = arith.constant 0 : index
    %c0_23 = arith.constant 0 : index
    %32 = vector.load %arg7[%c0_22, %c0_23] : memref<1x64xf32, #tpu.memory_space<vmem>>, vector<1x64xf32>
    tpu.vector_store %arg7[%c0_22, %c0_23], %13 {strides = array<i32>} : memref<1x64xf32, #tpu.memory_space<vmem>>, vector<1x64xf32>,
    %c0_i32_24 = arith.constant 0 : i32
    %33 = arith.cmpi eq, %arg2, %c0_i32_24 : i32
    %34 = arith.extui %33 : i1 to i32
    %c0_i32_25 = arith.constant 0 : i32
    %35 = arith.cmpi ne, %34, %c0_i32_25 : i32
    scf.if %35 {
      %c0_26 = arith.constant 0 : index
      %c0_27 = arith.constant 0 : index
      %36 = vector.load %arg8[%c0_26, %c0_27] : memref<1x64xf32, #tpu.memory_space<vmem>>, vector<1x64xf32>
      %37 = tpu.reciprocal %36 {approx = true} : vector<1x64xf32> -> vector<1x64xf32>
      %c0_28 = arith.constant 0 : index
      %c0_29 = arith.constant 0 : index
      %38 = vector.load %arg9[%c0_28, %c0_29] : memref<32x64xf32, #tpu.memory_space<vmem>>, vector<32x64xf32>
      %39 = vector.broadcast %37 : vector<1x64xf32> to vector<32x64xf32>
      %40 = arith.mulf %38, %39 : vector<32x64xf32>
      %c0_30 = arith.constant 0 : index
      %c0_31 = arith.constant 0 : index
      %c0_32 = arith.constant 0 : index
      %41 = vector.load %arg6[%c0_30, %c0_31, %c0_32] : memref<1x32x64xf32, #tpu.memory_space<vmem>>, vector<1x32x64xf32>
      %42 = vector.shape_cast %41 : vector<1x32x64xf32> to vector<32x64xf32>
      %43 = vector.shape_cast %40 : vector<32x64xf32> to vector<1x32x64xf32>
      tpu.vector_store %arg6[%c0_30, %c0_31, %c0_32], %43 {strides = array<i32>} : memref<1x32x64xf32, #tpu.memory_space<vmem>>, vector<1x32x64xf32>,
    } else {
    }
    return
  }
  func.func @transform_0(%arg0: i32, %arg1: i32, %arg2: i32) -> (i32, i32, i32) {
    %c0_i32 = arith.constant 0 : i32
    %c0_i32_0 = arith.constant 0 : i32
    return %arg0, %c0_i32, %arg1 : i32, i32, i32
  }
  func.func @transform_1(%arg0: i32, %arg1: i32, %arg2: i32) -> (i32, i32, i32) {
    %c0_i32 = arith.constant 0 : i32
    %c0_i32_0 = arith.constant 0 : i32
    return %arg0, %arg2, %c0_i32 : i32, i32, i32
  }
  func.func @transform_2(%arg0: i32, %arg1: i32, %arg2: i32) -> (i32, i32, i32) {
    %c0_i32 = arith.constant 0 : i32
    %c0_i32_0 = arith.constant 0 : i32
    return %arg0, %c0_i32, %arg2 : i32, i32, i32
  }
  func.func @transform_3(%arg0: i32, %arg1: i32, %arg2: i32) -> (i32, i32, i32) {
    %c0_i32 = arith.constant 0 : i32
    %c0_i32_0 = arith.constant 0 : i32
    return %arg0, %c0_i32, %arg1 : i32, i32, i32
  }
}

</mosaic_0001>

<bundles_post_ra>
// kernel: self_attention_2d.1
= control target key start
LH: loop header
LB: loop body
LE: loop exit
PB: predicated region body
PF: predicated region fallthrough
CT: control target
= control target key end

     0   :  { %s879_s12 = smov 0   ;;  %s881_s13 = smov 0   ;;  %s970_s0 = inlined_call_operand.vmem [shape: bf16[2,4,64], index: 0, kind: input, shape index: {}]   ;;  %s971_s1 = inlined_call_operand.vmem [shape: bf16[2,64,4], index: 1, kind: input, shape index: {}]   ;;  %s972_s2 = inlined_call_operand.vmem [shape: bf16[2,32,64], index: 2, kind: input, shape index: {}]   ;;  %s973_s3 = inlined_call_operand.vmem [shape: f32[2,32,64], index: 3, kind: output, shape index: {}]  }
   0x1   :  { %s883_s14 = smov 0  }
   0x2 LB: > { %s32_s15 = sadd.s32 1, %s851_s13  ;;  %p722_p0 = scmp.ge.s32.totalorder %s855_s14, 1  ;;  %s855_s14 = sphi %s883_s14, %s13_s14   ;;  %s851_s13 = sphi %s881_s13, %s975_s13   ;;  %s847_s12 = sphi %s879_s12, %s974_s12  }
   0x3   : > { %p34_p1 = scmp.ge.s32.totalorder %s32_s15, 2  ;;  %p194_p2 = scmp.lt.s32.totalorder %s855_s14, 3 }
   0x5   : > { %s977_s15 = smov (%p34_p1, %s32_s15), 0  ;;  %p195_p3 = pnand %p722_p0, %p194_p2 }
   0x6   : > { %p240_p4 = scmp.lt.s32.totalorder (!%p195_p3), %s847_s12, 1 }
   0x7   : > { %198 = sbr.rel (%p195_p3) target bundleno = 505 (0x1f9), region = 32 }
   0xc   : > { %s979_s12 = smov (!%p240_p4, %s847_s12), 1  ;;  %vm332_vm0 = vcmask 1041408   ;;  %vm319_vm1 = vcmask 31744   ;;  %vm278_vm2 = vcmask 516096   ;;  %v857_v6 = vmov -inf  }
   0xd   : > { %s723_s16 = sshll.u32 %s979_s12, 1  ;;  %s744_s17 = sshll.u32 %s979_s12, 5  ;;  %279 = vst.msk [vmem:[#allocation2] sm:$0x1] %vm278_vm2, %v857_v6  ;;  %vm281_vm3 = vcmask 523264   ;;  %v858_v7 = vmov 0.0   ;;  %v429_v34 = vlaneseq }
   0xe   : > { %s246_s20 = scalar_lea.vmem %s970_s0, %s723_s16  ;;  %s255_s23 = scalar_lea.vmem %s971_s1, %s744_s17  ;;  %280 = vst.msk [vmem:[#allocation3] sm:$0x1] %vm278_vm2, %v858_v7 }
   0xf   : > { %v286_v0 = vld [vmem:[%s246_s20] sm:$0x3]  ;;  %v808_v3 = vld [vmem:[%s255_s23 + $0x8] sm:$0xff]   ;;  %v809_v4 = vld [vmem:[%s255_s23 + $0x10] sm:$0xff]   ;;  %284 = vst.msk [vmem:[#allocation4 + $0x10] sm:$0xff] %vm281_vm3, %v858_v7  ;;  %s745_s24 = sshll.u32 %s979_s12, 4  ;;  %s272_s30 = scalar_lea.vmem %s973_s3, %s744_s17 }
  0x10   : > { %780 = vmatprep.subr.msk.bf16.mxu0 %vm332_vm0, %v286_v0  ;;  %v334_v1 = vsel %vm332_vm0, %v286_v0, 0  ;;  %v807_v2 = vld [vmem:[%s255_s23] sm:$0xff]   ;;  %v810_v5 = vld [vmem:[%s255_s23 + $0x18] sm:$0xff]   ;;  %282 = vst.msk [vmem:[#allocation4] sm:$0xff] %vm281_vm3, %v858_v7  ;;  %283 = vst.msk [vmem:[#allocation4 + $0x8] sm:$0xff] %vm281_vm3, %v858_v7  ;;  %s919_s27 = scalar_lea.vmem %s972_s2, %s745_s24  ;;  %v430_v37 = vshrl.u32 %v429_v34, 7 }
  0x11   : > { %759 = vmatpush3.bf16.msra.mxu0 %v334_v1  ;;  %760 = vmatprep.mubr.msk.bf16.mxu0 %vm319_vm1, %v807_v2  ;;  %285 = vst.msk [vmem:[#allocation4 + $0x18] sm:$0xff] %vm281_vm3, %v858_v7  ;;  %v811_v8 = vld [vmem:[%s919_s27] sm:$0xff]  }
  0x12   : > { %776 = vmatprep.mubr.msk.bf16.mxu1 %vm281_vm3, %v811_v8  ;;  %v931_v41 = vsub.s32 0, %v430_v37 }
  0x14   : > { %761 = vmatmul.mubr.msk.bf16.vlgmr.msra.gmra.mxu0 %vm319_vm1, %v808_v3  ;;  %v401_v39 = vld [vmem:[#allocation2] sm:$0x1] }
  0x15   : > { %764 = vmatprep.mubr.msk.bf16.mxu0 %vm319_vm1, %v809_v4 }
  0x1c   : > { %765 = vmatmul.mubr.msk.bf16.gmra.mxu0 %vm319_vm1, %v810_v5 }
  0xd4   : > { %v762_v9 = vpop.f32.mrf.mxu0 }
  0xd5   : > { %v405_v22 = vsel %vm281_vm3, %v762_v9, -inf }
  0xd6   : > { %v370_v10 = vpop.f32.mrf.mxu0 }
  0xd7   : > { %v403_v23 = vsel %vm281_vm3, %v370_v10, -inf }
  0xd8   : > { %v763_v11 = vpop.f32.mrf.mxu0 }
  0xd9   : > { %v406_v16 = vsel %vm281_vm3, %v763_v11, -inf }
  0xda   : > { %v373_v12 = vpop.f32.mrf.mxu0 }
  0xdb   : > { %v404_v24 = vsel %vm281_vm3, %v373_v12, -inf }
  0xdc   : > { %v766_v13 = vpop.f32.mrf.mxu0 }
  0xdd   : > { %v411_v17 = vsel %vm281_vm3, %v766_v13, -inf }
  0xde   : > { %v386_v14 = vpop.f32.mrf.mxu0  ;;  %v412_v26 = vmax.f32 %v405_v22, %v411_v17 }
  0xdf   : > { %v407_v18 = vsel %vm281_vm3, %v386_v14, -inf }
  0xe0   : > { %v767_v15 = vpop.f32.mrf.mxu0  ;;  %v408_v27 = vmax.f32 %v403_v23, %v407_v18 }
  0xe1   : > { %v413_v19 = vsel %vm281_vm3, %v767_v15, -inf }
  0xe2   : > { %v414_v20 = vmax.f32 %v406_v16, %v413_v19  ;;  %v389_v21 = vpop.f32.mrf.mxu0 }
  0xe3   : > { %v409_v25 = vsel %vm281_vm3, %v389_v21, -inf }
  0xe4   : > { %v410_v28 = vmax.f32 %v404_v24, %v409_v25  ;;  %v416_v29 = vmax.f32 %v412_v26, %v414_v20 }
  0xe6   : > { %v415_v30 = vmax.f32 %v408_v27, %v410_v28  ;;  %v812_v28 = vld [vmem:[%s919_s27 + $0x8] sm:$0xff]  }
  0xe8   : > { %v417_v31 = vmax.f32 %v415_v30, %v416_v29 }
  0xea   : > { %v418_v32 = vrot.slane %v417_v31, 4 }
  0xec   : > { %v419_v33 = vmax.f32 %v417_v31, %v418_v32  ;;  %v458_v31 = vld [vmem:[#allocation3] sm:$0x1] }
  0xee   : > { %v420_v35 = vrot.slane %v419_v33, 2 }
  0xf0   : > { %v421_v36 = vmax.f32 %v419_v33, %v420_v35 }
  0xf2   : > { %v422_v38 = vrot.slane %v421_v36, 1 }
  0xf4   : > { %v423_v40 = vmax.f32 %v421_v36, %v422_v38  ;;  %v486_v38 = vld [vmem:[#allocation4 + $0x10] sm:$0xff] }
  0xf6   : > { %v424_v42 = vmax.f32 %v401_v39, %v423_v40 }
  0xf8   : > { %v432_v43 = vrot.slane %v424_v42, %v931_v41  ;;  %575 = vst.msk [vmem:[#allocation2] sm:$0x1] %vm278_vm2, %v424_v42  ;;  %v425_v2 = vsub.f32 %v401_v39, %v424_v42  ;;  %v484_v39 = vld [vmem:[#allocation4] sm:$0xff] }
  0xfa   : > { %v434_v44 = vsub.f32 %v370_v10, %v432_v43  ;;  %v435_v45 = vsub.f32 %v373_v12, %v432_v43  ;;  %v436_v46 = vsub.f32 %v762_v9, %v432_v43  ;;  %v437_v47 = vsub.f32 %v763_v11, %v432_v43 }
  0xfb   : > { %v438_v48 = vsub.f32 %v386_v14, %v432_v43  ;;  %v439_v49 = vsub.f32 %v389_v21, %v432_v43  ;;  %v440_v53 = vsub.f32 %v766_v13, %v432_v43  ;;  %v441_v55 = vsub.f32 %v767_v15, %v432_v43  ;;  %v487_v43 = vld [vmem:[#allocation4 + $0x18] sm:$0xff] }
  0xfc   : > { %v442_v50 = vmul.f32 1.442695, %v434_v44  ;;  %v444_v51 = vmul.f32 1.442695, %v435_v45  ;;  %v446_v52 = vmul.f32 1.442695, %v436_v46 }
  0xfd   : > { %v448_v54 = vmul.f32 1.442695, %v437_v47  ;;  %v450_v56 = vmul.f32 1.442695, %v438_v48  ;;  %v452_v57 = vmul.f32 1.442695, %v439_v49 }
  0xfe   : > { %813 = vpow2.f32 %v442_v50  ;;  %v454_v58 = vmul.f32 1.442695, %v440_v53  ;;  %v456_v59 = vmul.f32 1.442695, %v441_v55  ;;  %v426_v11 = vmul.f32 1.442695, %v425_v2 }
  0xff   : > { %815 = vpow2.f32 %v444_v51  ;;  %v485_v47 = vld [vmem:[#allocation4 + $0x8] sm:$0xff] }
 0x100   : > { %817 = vpow2.f32 %v446_v52 }
 0x101   : > { %819 = vpow2.f32 %v448_v54 }
 0x102   : > { %821 = vpow2.f32 %v450_v56 }
 0x103   : > { %823 = vpow2.f32 %v452_v57 }
 0x104   : > { %825 = vpow2.f32 %v454_v58 }
 0x105   : > { %827 = vpow2.f32 %v456_v59 }
 0x106   : > { %829 = vpow2.f32 %v426_v11 }
 0x10b   : > { %v814_v60 = vpop.eup %813 }
 0x10c   : > { %v816_v61 = vpop.eup %815  ;;  %v460_v62 = vsel %vm281_vm3, %v814_v60, 0.0 }
 0x10d   : > { %v818_v63 = vpop.eup %817  ;;  %v461_v0 = vsel %vm281_vm3, %v816_v61, 0.0  ;;  %v498_v25 = vpack.c.bf16 %v816_v61, %v814_v60 }
 0x10e   : > { %v820_v1 = vpop.eup %819  ;;  %v462_v3 = vadd.f32 %v461_v0, %v460_v62  ;;  %v463_v5 = vsel %vm281_vm3, %v818_v63, 0.0 }
 0x10f   : > { %v822_v4 = vpop.eup %821  ;;  %v465_v9 = vsel %vm281_vm3, %v820_v1, 0.0  ;;  %v499_v22 = vpack.c.bf16 %v820_v1, %v818_v63 }
 0x110   : > { %v824_v6 = vpop.eup %823  ;;  %v464_v7 = vadd.f32 %v463_v5, %v462_v3  ;;  %v467_v13 = vsel %vm281_vm3, %v822_v4, 0.0 }
 0x111   : > { %v826_v8 = vpop.eup %825  ;;  %v469_v16 = vsel %vm281_vm3, %v824_v6, 0.0  ;;  %v500_v17 = vpack.c.bf16 %v824_v6, %v822_v4 }
 0x112   : > { %v828_v10 = vpop.eup %827  ;;  %v466_v12 = vadd.f32 %v465_v9, %v464_v7  ;;  %v471_v19 = vsel %vm281_vm3, %v826_v8, 0.0 }
 0x113   : > { %v501_v14 = vpack.c.bf16 %v828_v10, %v826_v8  ;;  %v473_v21 = vsel %vm281_vm3, %v828_v10, 0.0  ;;  %v830_v30 = vpop.eup %829 }
 0x114   : > { %v468_v15 = vadd.f32 %v467_v13, %v466_v12  ;;  %v459_v34 = vmul.f32 %v830_v30, %v458_v31  ;;  %v492_v37 = vrot.slane %v830_v30, %v931_v41 }
 0x115   : > { %768 = vmatprep.subr.bf16.mxu1 %v501_v14 }
 0x116   : > { %v470_v18 = vadd.f32 %v469_v16, %v468_v15  ;;  %769 = vmatpush3.bf16.msra.mxu1 %v501_v14  ;;  %v496_v40 = vmul.f32 %v492_v37, %v486_v38  ;;  %v494_v45 = vmul.f32 %v492_v37, %v484_v39  ;;  %v497_v49 = vmul.f32 %v492_v37, %v487_v43 }
 0x117   : > { %770 = vmatprep.subr.bf16.mxu1 %v500_v17  ;;  %v495_v52 = vmul.f32 %v492_v37, %v485_v47 }
 0x118   : > { %v472_v20 = vadd.f32 %v471_v19, %v470_v18 }
 0x11a   : > { %v474_v23 = vadd.f32 %v473_v21, %v472_v20  ;;  %771 = vmatpush3.bf16.msra.mxu1 %v500_v17 }
 0x11b   : > { %772 = vmatprep.subr.bf16.mxu1 %v499_v22 }
 0x11c   : > { %v475_v24 = vrot.slane %v474_v23, 4 }
 0x11e   : > { %v476_v26 = vadd.f32 %v475_v24, %v474_v23  ;;  %773 = vmatpush3.bf16.msra.mxu1 %v499_v22 }
 0x11f   : > { %774 = vmatprep.subr.bf16.mxu1 %v498_v25 }
 0x120   : > { %v477_v27 = vrot.slane %v476_v26, 2 }
 0x122   : > { %v478_v29 = vadd.f32 %v477_v27, %v476_v26  ;;  %775 = vmatpush3.bf16.msra.mxu1 %v498_v25 }
 0x124   : > { %v479_v32 = vrot.slane %v478_v29, 1 }
 0x125   : > { %777 = vmatmul.mubr.msk.bf16.vlgmr.msra.gmra.mxu1 %vm281_vm3, %v812_v28 }
 0x126   : > { %v480_v33 = vadd.f32 %v479_v32, %v478_v29 }
 0x128   : > { %v481_v35 = vadd.f32 %v480_v33, %v459_v34 }
 0x12a   : > { %483 = vst.msk [vmem:[#allocation3] sm:$0x1] %vm278_vm2, %v481_v35 }
 0x131   : > { %v579_v36 = vld [vmem:[#allocation3] sm:$0x1] }
 0x132   : > { %831 = vrcp.f32 %v579_v36 }
 0x13f   : > { %v832_v53 = vpop.eup %831 }
 0x140   : > { %v589_v56 = vrot.slane %v832_v53, %v931_v41 }
 0x1e5   : > { %v778_v42 = vpop.f32.mrf.mxu1 }
 0x1e6   : > { %v569_v44 = vadd.f32 %v778_v42, %v496_v40 }
 0x1e7   : > { %v552_v46 = vpop.f32.mrf.mxu1 }
 0x1e8   : > { %573 = vst.msk [vmem:[#allocation4 + $0x10] sm:$0xff] %vm281_vm3, %v569_v44  ;;  %v567_v48 = vadd.f32 %v552_v46, %v494_v45 }
 0x1e9   : > { %v779_v50 = vpop.f32.mrf.mxu1 }
 0x1ea   : > { %571 = vst.msk [vmem:[#allocation4] sm:$0xff] %vm281_vm3, %v567_v48  ;;  %v570_v51 = vadd.f32 %v779_v50, %v497_v49 }
 0x1eb   : > { %v555_v54 = vpop.f32.mrf.mxu1 }
 0x1ec   : > { %574 = vst.msk [vmem:[#allocation4 + $0x18] sm:$0xff] %vm281_vm3, %v570_v51  ;;  %v568_v55 = vadd.f32 %v555_v54, %v495_v52 }
 0x1ee   : > { %572 = vst.msk [vmem:[#allocation4 + $0x8] sm:$0xff] %vm281_vm3, %v568_v55 }
 0x1ef   : > { %v583_v57 = vld [vmem:[#allocation4 + $0x10] sm:$0xff] }
 0x1f0   : > { %v593_v58 = vmul.f32 %v589_v56, %v583_v57 }
 0x1f1   : > { %v581_v59 = vld [vmem:[#allocation4] sm:$0xff] }
 0x1f2   : > { %597 = vst.msk [vmem:[%s272_s30 + $0x10] sm:$0xff] %vm281_vm3, %v593_v58  ;;  %v591_v60 = vmul.f32 %v589_v56, %v581_v59 }
 0x1f3   : > { %v584_v61 = vld [vmem:[#allocation4 + $0x18] sm:$0xff] }
 0x1f4   : > { %595 = vst.msk [vmem:[%s272_s30] sm:$0xff] %vm281_vm3, %v591_v60  ;;  %v594_v62 = vmul.f32 %v589_v56, %v584_v61 }
 0x1f5   : > { %v582_v63 = vld [vmem:[#allocation4 + $0x8] sm:$0xff] }
 0x1f6   : > { %598 = vst.msk [vmem:[%s272_s30 + $0x18] sm:$0xff] %vm281_vm3, %v594_v62  ;;  %v592_v41 = vmul.f32 %v589_v56, %v582_v63 }
 0x1f8   : > { %596 = vst.msk [vmem:[%s272_s30 + $0x8] sm:$0xff] %vm281_vm3, %v592_v41 }
 0x1f9 PF: > { %s13_s14 = sadd.s32 1, %s855_s14   ;;  %s974_s12 = smov %s851_s13 }
 0x1fa   : > { %p10_p5 = scmp.ge.s32.totalorder %s13_s14, 4   ;;  %s975_s13 = smov %s977_s15 }
 0x1fc   :  { %12 = sbr.rel (!%p10_p5) target bundleno = 2 (0x2), region = 76 }

</bundles_post_ra>
